<compile_context>
chip_gen: v7x
topology: tpu7x:2x2x1
jax: 0.10.0
libtpu: 0.0.40
codegen_flags: <defaults>
</compile_context>

<pallas_src>
import functools

import numpy as np

import jax
import jax.numpy as jnp
from jax.experimental import pallas as pl
from jax.experimental.pallas import tpu as pltpu  # noqa: F401  (TPU backend assumed)


# ----------------------------- fused Pallas kernel -------------------------

def _fused_moe_kernel(top_k,
                      hid_ref, wmh_ref, wr_ref, grp_ref, part_ref, rep_ref,
                      low_ref, summ_ref, expand_ref, wgu_ref, wd_ref,
                      y_ref, logits_ref):
    dt = hid_ref.dtype

    # 1) multi_head projection                          (R, H) @ (H, H)
    x = jnp.dot(hid_ref[...], wmh_ref[...], preferred_element_type=jnp.float32)
    xc = x.astype(dt)

    # 2) per-head router logits via block-diag router   (R, H) @ (H, nh*E)
    logits = jnp.dot(xc, wr_ref[...], preferred_element_type=jnp.float32)
    logits_ref[...] = logits

    # 3) per-head softmax.  Subtracting the per-row global max is a per-row
    #    constant shift, so every head-group softmax is unchanged but exp()
    #    stays in range.  Head-group sums come from a tiny block-ones matmul.
    p = jnp.exp(logits - jnp.max(logits, axis=-1, keepdims=True))
    denom = jnp.dot(p, grp_ref[...], preferred_element_type=jnp.float32)
    rw = p / denom                                                   # (R, nh*E)

    # 4) top-k mask per head.  In-group pairwise compares are expressed as
    #    tiny permutation matmuls (partner gather / replicate / rank-sum) so
    #    there is no lane<->sublane relayout and no lax.top_k.  Equal values
    #    are tie-broken by lower index (matches torch.topk / lax.top_k).
    partners = jnp.dot(rw, part_ref[...], preferred_element_type=jnp.float32)
    rw_rep = jnp.dot(rw, rep_ref[...], preferred_element_type=jnp.float32)
    beats = (jnp.where(partners > rw_rep, 1.0, 0.0)
             + jnp.where(partners == rw_rep, 1.0, 0.0) * low_ref[...])
    rank = jnp.dot(beats, summ_ref[...], preferred_element_type=jnp.float32)
    dense_rw = jnp.where(rank < top_k, rw, 0.0)                      # (R, nh*E)

    # 5) all heads x all experts: gate & up fused into one lane-dense matmul
    gu = jnp.dot(xc, wgu_ref[...], preferred_element_type=jnp.float32)  # (R, 2*nh*E*F)
    nef = gu.shape[-1] // 2
    gate = gu[:, :nef]            # 128-aligned static lane slices -> free views
    up = gu[:, nef:]
    # broadcast routing weights across F lanes with a 0/1 matmul (lane-dense)
    slab = jnp.dot(dense_rw.astype(dt), expand_ref[...],
                   preferred_element_type=jnp.float32)               # (R, nh*E*F)
    h = jax.nn.silu(gate) * up * slab                                # f32 VPU/EUP

    # 6) down projection with the merge matmul folded into the weight (K=512)
    y = jnp.dot(h.astype(dt), wd_ref[...], preferred_element_type=jnp.float32)
    y_ref[...] = y.astype(y_ref.dtype)


def fused_forward(hid2d, prep, *, top_k):
    R, H = hid2d.shape
    NE = prep["w_router_bd"].shape[1]
    operands = (hid2d, prep["w_multi_head"], prep["w_router_bd"], prep["grp"],
                prep["partner"], prep["rep"], prep["low"], prep["summ"],
                prep["expand"], prep["wgu_bd"], prep["wd_merged"])
    P = prep["partner"].shape[1]
    NGU = prep["wgu_bd"].shape[1]
    NEF = NGU // 2
    flops = 2 * R * (H * H + H * NE + NE * NE + 3 * NE * P
                     + NE * NEF + H * NGU + NEF * H)
    transcendentals = R * (NE + NEF)
    in_bytes = sum(int(np.prod(a.shape)) * a.dtype.itemsize for a in operands)
    out_bytes = R * H * hid2d.dtype.itemsize + R * NE * 4
    return pl.pallas_call(
        functools.partial(_fused_moe_kernel, top_k),
        out_shape=(jax.ShapeDtypeStruct((R, H), hid2d.dtype),      # merged output
                   jax.ShapeDtypeStruct((R, NE), jnp.float32)),    # per-head logits
        cost_estimate=pl.CostEstimate(flops=int(flops),
                                      transcendentals=int(transcendentals),
                                      bytes_accessed=int(in_bytes + out_bytes)),
    )(*operands)


# ------------------------ one-time weight preparation -----------------------

def prepare_params(params, num_heads, dtype=None):
    """Hoisted out of the forward: block-diag expansion, gate/up concat,
    merge-into-down fold, and static 0/1 routing helper matrices."""
    H = params["w_multi_head"].shape[0]
    E, Dh, F = params["w_gate"].shape
    nh = num_heads
    if dtype is None:
        dtype = params["w_multi_head"].dtype   # use jnp.bfloat16 in production

    def bd(w):  # (K, N) -> (nh*K, nh*N) block-diag with identical blocks
        K, N = w.shape
        eye = jnp.eye(nh, dtype=w.dtype)
        return jnp.einsum("hg,kn->hkgn", eye, w).reshape(nh * K, nh * N)

    w_router_bd = bd(params["w_router"]).astype(jnp.float32)               # (H, nh*E)
    wg_all = jnp.transpose(params["w_gate"], (1, 0, 2)).reshape(Dh, E * F)
    wu_all = jnp.transpose(params["w_up"], (1, 0, 2)).reshape(Dh, E * F)
    wd_all = params["w_down"].reshape(E * F, Dh)
    wgu_bd = jnp.concatenate([bd(wg_all), bd(wu_all)], axis=1).astype(dtype)  # (H, 2*nh*E*F)
    wd_merged = jnp.dot(bd(wd_all), params["w_merge"],
                        precision=jax.lax.Precision.HIGHEST).astype(dtype)    # (nh*E*F, H)

    # --- static 0/1 routing helper matrices (numpy, built once) ---
    NE, NEF = nh * E, nh * E * F
    qs, lows = [], []
    for d in range(1, E):
        q = np.zeros((NE, NE), np.float32)
        low = np.zeros((NE,), np.float32)
        for h in range(nh):
            for l in range(E):
                e = h * E + l
                j = h * E + ((l + d) % E)          # in-group partner at offset d
                q[j, e] = 1.0
                low[e] = 1.0 if ((l + d) % E) < l else 0.0   # partner has lower index
        qs.append(q)
        lows.append(low)
    partner = np.concatenate(qs, axis=1)                                   # (NE, (E-1)*NE)
    rep = np.concatenate([np.eye(NE, dtype=np.float32)] * (E - 1), axis=1)
    low = np.concatenate(lows)[None, :]                                    # (1, (E-1)*NE)
    summ = np.concatenate([np.eye(NE, dtype=np.float32)] * (E - 1), axis=0)
    grp = np.kron(np.eye(nh, dtype=np.float32), np.ones((E, E), np.float32))  # head groups
    expand = np.zeros((NE, NEF), np.float32)
    for g in range(NE):
        expand[g, g * F:(g + 1) * F] = 1.0

    return {
        "w_multi_head": params["w_multi_head"].astype(dtype),
        "w_router_bd": w_router_bd,
        "wgu_bd": wgu_bd,
        "wd_merged": wd_merged,
        "grp": jnp.asarray(grp),
        "partner": jnp.asarray(partner),
        "rep": jnp.asarray(rep),
        "low": jnp.asarray(low),
        "summ": jnp.asarray(summ),
        "expand": jnp.asarray(expand, dtype=dtype),
    }


# ------------------------------ forward pass --------------------------------

def anemone_sparse_moe_block(hidden_states, prep, num_heads, top_k):
    B, S, H = hidden_states.shape
    y2d, logits_wide = fused_forward(hidden_states.reshape(B * S, H), prep, top_k=top_k)
    E = logits_wide.shape[1] // num_heads
    return y2d.reshape(B, S, H), logits_wide.reshape(B * S * num_heads, E)


# ------------------------------ pure-JAX ref ---------------------------------

def ref_forward(hidden_states, params, num_heads, top_k):
    B, S, H = hidden_states.shape
    Dh = H // num_heads
    E = params["w_gate"].shape[0]
    x = hidden_states.reshape(-1, H) @ params["w_multi_head"]
    xh = x.reshape(-1, Dh)
    T = xh.shape[0]
    logits = xh @ params["w_router"]
    rw = jax.nn.softmax(logits.astype(jnp.float32), axis=-1)
    tw, ti = jax.lax.top_k(rw, top_k)
    dense = jnp.zeros_like(rw).at[jnp.arange(T)[:, None], ti].set(tw)
    out = jnp.zeros((T, Dh), dtype=hidden_states.dtype)
    for e in range(E):
        g = xh @ params["w_gate"][e]
        u = xh @ params["w_up"][e]
        h = jax.nn.silu(g) * u
        out = out + dense[:, e:e + 1] * (h @ params["w_down"][e])
    y = out.reshape(-1, H) @ params["w_merge"]
    return y.reshape(B, S, H), logits


# --------------------------------- main --------------------------------------

if __name__ == "__main__":
    # config: hidden=32, intermediate=64, expert_num_heads=2 -> head_dim=16,
    # num_experts=4, top_k=2, hidden_act='silu'
    B, S, H = 2, 8, 32
    NUM_HEADS, E, TOP_K, FFN = 2, 4, 2, 64
    Dh = H // NUM_HEADS

    key = jax.random.PRNGKey(0)
    ks = jax.random.split(key, 7)
    scale = 0.05
    params = {
        # stored pre-transposed: (in, out) so kernels do x @ W
        "w_multi_head": scale * jax.random.normal(ks[0], (H, H), jnp.float32),
        "w_router": scale * jax.random.normal(ks[1], (Dh, E), jnp.float32),
        "w_gate": scale * jax.random.normal(ks[2], (E, Dh, FFN), jnp.float32),
        "w_up": scale * jax.random.normal(ks[3], (E, Dh, FFN), jnp.float32),
        "w_down": scale * jax.random.normal(ks[4], (E, FFN, Dh), jnp.float32),
        "w_merge": scale * jax.random.normal(ks[5], (H, H), jnp.float32),
    }
    hidden_states = jax.random.normal(ks[6], (B, S, H), jnp.float32)

    prep = prepare_params(params, NUM_HEADS)          # one-time weight prep
    fwd = jax.jit(functools.partial(anemone_sparse_moe_block,
                                    num_heads=NUM_HEADS, top_k=TOP_K))

    out, router_logits = fwd(hidden_states, prep)
    out = jax.block_until_ready(out)
    router_logits = jax.block_until_ready(router_logits)

    ref_out, ref_logits = ref_forward(hidden_states, params, NUM_HEADS, TOP_K)

    assert out.shape == (B, S, H)
    assert router_logits.shape == (B * S * NUM_HEADS, E)
    assert jnp.allclose(out, ref_out, atol=2e-5, rtol=2e-5)
    assert jnp.allclose(router_logits, ref_logits, atol=2e-5, rtol=2e-5)

    print("KERNEL_OK")
</pallas_src>

<mosaic_0001>
module attributes {stable_mosaic.version = 11 : i64} {
  func.func @_fused_moe_kernel(%arg0: memref<16x32xf32, #tpu.memory_space<vmem>>, %arg1: memref<32x32xf32, #tpu.memory_space<vmem>>, %arg2: memref<32x8xf32, #tpu.memory_space<vmem>>, %arg3: memref<8x8xf32, #tpu.memory_space<vmem>>, %arg4: memref<8x24xf32, #tpu.memory_space<vmem>>, %arg5: memref<8x24xf32, #tpu.memory_space<vmem>>, %arg6: memref<1x24xf32, #tpu.memory_space<vmem>>, %arg7: memref<24x8xf32, #tpu.memory_space<vmem>>, %arg8: memref<8x512xf32, #tpu.memory_space<vmem>>, %arg9: memref<32x1024xf32, #tpu.memory_space<vmem>>, %arg10: memref<512x32xf32, #tpu.memory_space<vmem>>, %arg11: memref<16x32xf32, #tpu.memory_space<vmem>>, %arg12: memref<16x8xf32, #tpu.memory_space<vmem>>) attributes {dimension_semantics = [], scalar_prefetch = 0 : i64, scratch_operands = 0 : i64, tpu.core_type = #tpu.core_type<tc>} {
    %c0 = arith.constant 0 : index
    %c0_0 = arith.constant 0 : index
    %0 = vector.load %arg0[%c0, %c0_0] : memref<16x32xf32, #tpu.memory_space<vmem>>, vector<16x32xf32>
    %c0_1 = arith.constant 0 : index
    %c0_2 = arith.constant 0 : index
    %1 = vector.load %arg1[%c0_1, %c0_2] : memref<32x32xf32, #tpu.memory_space<vmem>>, vector<32x32xf32>
    %cst = arith.constant dense<0.000000e+00> : vector<16x32xf32>
    %2 = tpu.matmul %0, %1, %cst {dimension_numbers = #tpu.dot_dimension_numbers<[1], [0], [0], [1], [0, 0, 1, 1], [], []>} : vector<16x32xf32>, vector<32x32xf32>, vector<16x32xf32> -> vector<16x32xf32>
    %c0_3 = arith.constant 0 : index
    %c0_4 = arith.constant 0 : index
    %3 = vector.load %arg2[%c0_3, %c0_4] : memref<32x8xf32, #tpu.memory_space<vmem>>, vector<32x8xf32>
    %cst_5 = arith.constant dense<0.000000e+00> : vector<16x8xf32>
    %4 = tpu.matmul %2, %3, %cst_5 {dimension_numbers = #tpu.dot_dimension_numbers<[1], [0], [0], [1], [0, 0, 1, 1], [], []>} : vector<16x32xf32>, vector<32x8xf32>, vector<16x8xf32> -> vector<16x8xf32>
    %c0_6 = arith.constant 0 : index
    %c0_7 = arith.constant 0 : index
    %5 = vector.load %arg12[%c0_6, %c0_7] : memref<16x8xf32, #tpu.memory_space<vmem>>, vector<16x8xf32>
    tpu.vector_store %arg12[%c0_6, %c0_7], %4 {strides = array<i32>} : memref<16x8xf32, #tpu.memory_space<vmem>>, vector<16x8xf32>,
    %cst_8 = arith.constant dense<0xFF800000> : vector<16xf32>
    %6 = vector.multi_reduction <maximumf>, %4, %cst_8 [1] : vector<16x8xf32> to vector<16xf32>
    %7 = vector.shape_cast %6 : vector<16xf32> to vector<16x1xf32>
    %8 = vector.broadcast %7 : vector<16x1xf32> to vector<16x8xf32>
    %9 = arith.subf %4, %8 : vector<16x8xf32>
    %10 = math.exp %9 : vector<16x8xf32>
    %c0_9 = arith.constant 0 : index
    %c0_10 = arith.constant 0 : index
    %11 = vector.load %arg3[%c0_9, %c0_10] : memref<8x8xf32, #tpu.memory_space<vmem>>, vector<8x8xf32>
    %cst_11 = arith.constant dense<0.000000e+00> : vector<16x8xf32>
    %12 = tpu.matmul %10, %11, %cst_11 {dimension_numbers = #tpu.dot_dimension_numbers<[1], [0], [0], [1], [0, 0, 1, 1], [], []>} : vector<16x8xf32>, vector<8x8xf32>, vector<16x8xf32> -> vector<16x8xf32>
    %13 = arith.divf %10, %12 : vector<16x8xf32>
    %c0_12 = arith.constant 0 : index
    %c0_13 = arith.constant 0 : index
    %14 = vector.load %arg4[%c0_12, %c0_13] : memref<8x24xf32, #tpu.memory_space<vmem>>, vector<8x24xf32>
    %cst_14 = arith.constant dense<0.000000e+00> : vector<16x24xf32>
    %15 = tpu.matmul %13, %14, %cst_14 {dimension_numbers = #tpu.dot_dimension_numbers<[1], [0], [0], [1], [0, 0, 1, 1], [], []>} : vector<16x8xf32>, vector<8x24xf32>, vector<16x24xf32> -> vector<16x24xf32>
    %c0_15 = arith.constant 0 : index
    %c0_16 = arith.constant 0 : index
    %16 = vector.load %arg5[%c0_15, %c0_16] : memref<8x24xf32, #tpu.memory_space<vmem>>, vector<8x24xf32>
    %cst_17 = arith.constant dense<0.000000e+00> : vector<16x24xf32>
    %17 = tpu.matmul %13, %16, %cst_17 {dimension_numbers = #tpu.dot_dimension_numbers<[1], [0], [0], [1], [0, 0, 1, 1], [], []>} : vector<16x8xf32>, vector<8x24xf32>, vector<16x24xf32> -> vector<16x24xf32>
    %18 = arith.cmpf ogt, %15, %17 : vector<16x24xf32>
    %cst_18 = arith.constant 1.000000e+00 : f32
    %cst_19 = arith.constant 0.000000e+00 : f32
    %19 = vector.broadcast %cst_18 : f32 to vector<16x24xf32>
    %20 = vector.broadcast %cst_19 : f32 to vector<16x24xf32>
    %21 = arith.select %18, %19, %20 : vector<16x24xi1>, vector<16x24xf32>
    %22 = arith.cmpf oeq, %15, %17 : vector<16x24xf32>
    %cst_20 = arith.constant 1.000000e+00 : f32
    %cst_21 = arith.constant 0.000000e+00 : f32
    %23 = vector.broadcast %cst_20 : f32 to vector<16x24xf32>
    %24 = vector.broadcast %cst_21 : f32 to vector<16x24xf32>
    %25 = arith.select %22, %23, %24 : vector<16x24xi1>, vector<16x24xf32>
    %c0_22 = arith.constant 0 : index
    %c0_23 = arith.constant 0 : index
    %26 = vector.load %arg6[%c0_22, %c0_23] : memref<1x24xf32, #tpu.memory_space<vmem>>, vector<1x24xf32>
    %27 = vector.broadcast %26 : vector<1x24xf32> to vector<16x24xf32>
    %28 = arith.mulf %25, %27 : vector<16x24xf32>
    %29 = arith.addf %21, %28 : vector<16x24xf32>
    %c0_24 = arith.constant 0 : index
    %c0_25 = arith.constant 0 : index
    %30 = vector.load %arg7[%c0_24, %c0_25] : memref<24x8xf32, #tpu.memory_space<vmem>>, vector<24x8xf32>
    %cst_26 = arith.constant dense<0.000000e+00> : vector<16x8xf32>
    %31 = tpu.matmul %29, %30, %cst_26 {dimension_numbers = #tpu.dot_dimension_numbers<[1], [0], [0], [1], [0, 0, 1, 1], [], []>} : vector<16x24xf32>, vector<24x8xf32>, vector<16x8xf32> -> vector<16x8xf32>
    %cst_27 = arith.constant 2.000000e+00 : f32
    %32 = vector.broadcast %cst_27 : f32 to vector<16x8xf32>
    %33 = arith.cmpf olt, %31, %32 : vector<16x8xf32>
    %cst_28 = arith.constant 0.000000e+00 : f32
    %34 = vector.broadcast %cst_28 : f32 to vector<16x8xf32>
    %35 = arith.select %33, %13, %34 : vector<16x8xi1>, vector<16x8xf32>
    %c0_29 = arith.constant 0 : index
    %c0_30 = arith.constant 0 : index
    %36 = vector.load %arg9[%c0_29, %c0_30] : memref<32x1024xf32, #tpu.memory_space<vmem>>, vector<32x1024xf32>
    %cst_31 = arith.constant dense<0.000000e+00> : vector<16x1024xf32>
    %37 = tpu.matmul %2, %36, %cst_31 {dimension_numbers = #tpu.dot_dimension_numbers<[1], [0], [0], [1], [0, 0, 1, 1], [], []>} : vector<16x32xf32>, vector<32x1024xf32>, vector<16x1024xf32> -> vector<16x1024xf32>
    %38 = vector.extract_strided_slice %37 {offsets = [0, 0], sizes = [16, 512], strides = [1, 1]} : vector<16x1024xf32> to vector<16x512xf32>
    %39 = vector.extract_strided_slice %37 {offsets = [0, 512], sizes = [16, 512], strides = [1, 1]} : vector<16x1024xf32> to vector<16x512xf32>
    %c0_32 = arith.constant 0 : index
    %c0_33 = arith.constant 0 : index
    %40 = vector.load %arg8[%c0_32, %c0_33] : memref<8x512xf32, #tpu.memory_space<vmem>>, vector<8x512xf32>
    %cst_34 = arith.constant dense<0.000000e+00> : vector<16x512xf32>
    %41 = tpu.matmul %35, %40, %cst_34 {dimension_numbers = #tpu.dot_dimension_numbers<[1], [0], [0], [1], [0, 0, 1, 1], [], []>} : vector<16x8xf32>, vector<8x512xf32>, vector<16x512xf32> -> vector<16x512xf32>
    %42 = arith.negf %38 : vector<16x512xf32>
    %43 = math.exp %42 : vector<16x512xf32>
    %cst_35 = arith.constant 1.000000e+00 : f32
    %44 = vector.broadcast %cst_35 : f32 to vector<16x512xf32>
    %45 = arith.addf %44, %43 : vector<16x512xf32>
    %46 = arith.divf %44, %45 : vector<16x512xf32>
    %47 = arith.mulf %38, %46 : vector<16x512xf32>
    %48 = arith.mulf %47, %39 : vector<16x512xf32>
    %49 = arith.mulf %48, %41 : vector<16x512xf32>
    %c0_36 = arith.constant 0 : index
    %c0_37 = arith.constant 0 : index
    %50 = vector.load %arg10[%c0_36, %c0_37] : memref<512x32xf32, #tpu.memory_space<vmem>>, vector<512x32xf32>
    %cst_38 = arith.constant dense<0.000000e+00> : vector<16x32xf32>
    %51 = tpu.matmul %49, %50, %cst_38 {dimension_numbers = #tpu.dot_dimension_numbers<[1], [0], [0], [1], [0, 0, 1, 1], [], []>} : vector<16x512xf32>, vector<512x32xf32>, vector<16x32xf32> -> vector<16x32xf32>
    %c0_39 = arith.constant 0 : index
    %c0_40 = arith.constant 0 : index
    %52 = vector.load %arg11[%c0_39, %c0_40] : memref<16x32xf32, #tpu.memory_space<vmem>>, vector<16x32xf32>
    tpu.vector_store %arg11[%c0_39, %c0_40], %51 {strides = array<i32>} : memref<16x32xf32, #tpu.memory_space<vmem>>, vector<16x32xf32>,
    return
  }
}

</mosaic_0001>

<bundles_post_ra>
// kernel: anemone_sparse_moe_block.1
= control target key start
LH: loop header
LB: loop body
LE: loop exit
PB: predicated region body
PF: predicated region fallthrough
CT: control target
= control target key end

     0   :  { %vm47_vm0 = vcmask 261120   ;;  %s2296_s0 = inlined_call_operand.vmem [shape: f32[16,32], index: 0, kind: input, shape index: {}]   ;;  %s2297_s1 = inlined_call_operand.vmem [shape: f32[32,32], index: 1, kind: input, shape index: {}]   ;;  %s2298_s2 = inlined_call_operand.vmem [shape: f32[32,8], index: 2, kind: input, shape index: {}]   ;;  %s2299_s3 = inlined_call_operand.vmem [shape: f32[8,8], index: 3, kind: input, shape index: {}]   ;;  %s2300_s4 = inlined_call_operand.vmem [shape: f32[8,24], index: 4, kind: input, shape index: {}]   ;;  %s2301_s5 = inlined_call_operand.vmem [shape: f32[8,24], index: 5, kind: input, shape index: {}]   ;;  %s2302_s6 = inlined_call_operand.vmem [shape: f32[1,24], index: 6, kind: input, shape index: {}]   ;;  %s2303_s7 = inlined_call_operand.vmem [shape: f32[24,8], index: 7, kind: input, shape index: {}]   ;;  %s2304_s8 = inlined_call_operand.vmem [shape: f32[8,512], index: 8, kind: input, shape index: {}]   ;;  %s2305_s9 = inlined_call_operand.vmem [shape: f32[32,1024], index: 9, kind: input, shape index: {}]   ;;  %s2306_s10 = inlined_call_operand.vmem [shape: f32[512,32], index: 10, kind: input, shape index: {}]   ;;  %s2307_s11 = inlined_call_operand.hbm [shape: f32[16,32], index: 11, kind: output, shape index: {0}]   ;;  %s2308_s12 = inlined_call_operand.vmem [shape: f32[16,8], index: 12, kind: output, shape index: {1}]  }
   0x1   :  { %v43_v0 = vld [vmem:[%s2297_s1] sm:$0xff]  ;;  %v44_v1 = vld [vmem:[%s2297_s1 + $0x8] sm:$0xff]  ;;  %v45_v2 = vld [vmem:[%s2297_s1 + $0x10] sm:$0xff] }
   0x2   :  { %v1574_v3 = vpack.c.bf16 %v44_v1, %v43_v0  ;;  %v46_v4 = vld [vmem:[%s2297_s1 + $0x18] sm:$0xff]  ;;  %v41_v5 = vld [vmem:[%s2296_s0] sm:$0xff]  ;;  %v130_v8 = vld [vmem:[%s2298_s2 + $0x8] sm:$0xff] }
   0x3   :  { %v1578_v6 = vpack.c.bf16 %v46_v4, %v45_v2  ;;  %1536 = vmatprep.mubr.msk.f32.mxu0 %vm47_vm0, %v41_v5  ;;  %v129_v7 = vld [vmem:[%s2298_s2] sm:$0xff]  ;;  %v131_v9 = vld [vmem:[%s2298_s2 + $0x10] sm:$0xff]  ;;  %v132_v11 = vld [vmem:[%s2298_s2 + $0x18] sm:$0xff] }
   0x4   :  { %1575 = vmatprep.subr.bf16.mxu0 %v1574_v3  ;;  %v1582_v10 = vpack.c.bf16 %v130_v8, %v129_v7 }
   0x5   :  { %18 = vsyncpa [#allocation3], 0  ;;  %1577 = vmatpush3.bf16.msra.mxu0 %v1574_v3  ;;  %v1586_v12 = vpack.c.bf16 %v132_v11, %v131_v9  ;;  %v42_v13 = vld [vmem:[%s2296_s0 + $0x8] sm:$0xff]  ;;  %vm214_vm1 = vcmask 64512   ;;  %v229_v20 = vld [vmem:[%s2299_s3] sm:$0xff]  ;;  %v1758_v51 = vmov 0.0  }
   0x6   :  { %1579 = vmatprep.subr.bf16.mxu0 %v1578_v6  ;;  %1583 = vmatprep.subr.bf16.mxu1 %v1582_v10  ;;  %v315_v29 = vld [vmem:[%s2300_s4] sm:$0xff]  ;;  %v582_v31 = vld [vmem:[%s2305_s9 + $0x8] sm:$0xff]  ;;  %v494_v1 = vld [vmem:[%s2303_s7 + $0x10] sm:$0xff]  ;;  %vm495_vm6 = vcmask 195584  }
   0x7   :  { %1585 = vmatpush3.bf16.msra.mxu1 %v1582_v10  ;;  %v397_v30 = vld [vmem:[%s2301_s5] sm:$0xff]  ;;  %v590_v32 = vld [vmem:[%s2305_s9 + $0x48] sm:$0xff]  ;;  %v584_v2 = vld [vmem:[%s2305_s9 + $0x18] sm:$0xff] }
   0x8   :  { %1587 = vmatprep.subr.bf16.mxu1 %v1586_v12  ;;  %v1594_v33 = vpack.c.bf16 %v590_v32, %v582_v31  ;;  %v581_v36 = vld [vmem:[%s2305_s9] sm:$0xff]  ;;  %v598_v39 = vld [vmem:[%s2305_s9 + $0x88] sm:$0xff]  ;;  %v592_v3 = vld [vmem:[%s2305_s9 + $0x58] sm:$0xff] }
   0x9   :  { %1581 = vmatpush3.bf16.msra.mxu0 %v1578_v6  ;;  %v589_v37 = vld [vmem:[%s2305_s9 + $0x40] sm:$0xff]  ;;  %v606_v40 = vld [vmem:[%s2305_s9 + $0xc8] sm:$0xff]  ;;  %v1602_v4 = vpack.c.bf16 %v592_v3, %v584_v2  ;;  %v588_v31 = vld [vmem:[%s2305_s9 + $0x38] sm:$0xff] }
   0xa   :  { %1550 = vmatprep.subr.mxu0 %v229_v20  ;;  %v1596_v43 = vpack.c.bf16 %v589_v37, %v581_v36  ;;  %v1598_v45 = vpack.c.bf16 %v606_v40, %v598_v39  ;;  %v597_v46 = vld [vmem:[%s2305_s9 + $0x80] sm:$0xff]  ;;  %v586_v48 = vld [vmem:[%s2305_s9 + $0x28] sm:$0xff]  ;;  %v596_v32 = vld [vmem:[%s2305_s9 + $0x78] sm:$0xff] }
   0xb   :  { %1589 = vmatpush3.bf16.msra.mxu1 %v1586_v12  ;;  %v605_v47 = vld [vmem:[%s2305_s9 + $0xc0] sm:$0xff]  ;;  %v594_v49 = vld [vmem:[%s2305_s9 + $0x68] sm:$0xff]  ;;  %v1618_v37 = vpack.c.bf16 %v596_v32, %v588_v31  ;;  %v595_v39 = vld [vmem:[%s2305_s9 + $0x70] sm:$0xff] }
   0xc   :  { %1537 = vmatmul.mubr.msk.f32.vlgmr.msra.gmra.mrb[0].mxu0 %vm47_vm0, %v42_v13  ;;  %1555 = vmatprep.subr.mxu1 %v315_v29  ;;  %v1600_v50 = vpack.c.bf16 %v605_v47, %v597_v46  ;;  %v1610_v52 = vpack.c.bf16 %v594_v49, %v586_v48  ;;  %v585_v53 = vld [vmem:[%s2305_s9 + $0x20] sm:$0xff]  ;;  %v602_v55 = vld [vmem:[%s2305_s9 + $0xa8] sm:$0xff] }
   0xd   :  { %1551 = vmatpush3.msra.mxu0 %v229_v20  ;;  %v593_v54 = vld [vmem:[%s2305_s9 + $0x60] sm:$0xff]  ;;  %v610_v56 = vld [vmem:[%s2305_s9 + $0xe8] sm:$0xff] }
   0xe   :  { %1560 = vmatprep.subr.mxu0 %v397_v30  ;;  %v1612_v57 = vpack.c.bf16 %v593_v54, %v585_v53  ;;  %v1614_v58 = vpack.c.bf16 %v610_v56, %v602_v55  ;;  %v601_v59 = vld [vmem:[%s2305_s9 + $0xa0] sm:$0xff]  ;;  %v493_v63 = vld [vmem:[%s2303_s7 + $0x8] sm:$0xff] }
   0xf   :  { %v609_v60 = vld [vmem:[%s2305_s9 + $0xe0] sm:$0xff]  ;;  %v922_v5 = vld [vmem:[%s2304_s8 + $0x8] sm:$0xff] }
  0x10   :  { %v1616_v61 = vpack.c.bf16 %v609_v60, %v601_v59  ;;  %v492_v62 = vld [vmem:[%s2303_s7] sm:$0xff] }
  0x11   :  { %v1590_v0 = vpack.c.bf16 %v493_v63, %v492_v62  ;;  %v921_v6 = vld [vmem:[%s2304_s8] sm:$0xff]  ;;  %v923_v63 = vld [vmem:[%s2304_s8 + $0x10] sm:$0xff] }
  0x12   :  { %v1403_v9 = vld [vmem:[%s2302_s6] ss:$0 sm:$0xff] }
  0xdf   :  { %v1859_v14 = vpop.f32.mrb[0].mxu0 }
  0xe0   :  { %v1861_v15 = vpop.f32.mrb[1].mxu0 }
  0xe1   :  { %1547 = vmatprep.mubr.msk.f32.mxu1 %vm47_vm0, %v1861_v15 }
  0xe2   :  { %1548 = vmatmul.mubr.msk.f32.vlgmr.msra.gmra.mrb[0].mxu1 %vm47_vm0, %v1859_v14 }
  0xe3   :  { %1556 = vmatpush3.msra.mxu1 %v315_v29  ;;  %v607_v29 = vld [vmem:[%s2305_s9 + $0xd0] sm:$0xff] }
  0xe4   :  { %1591 = vmatprep.subr.bf16.mxu1 %v1590_v0 }
 0x1b5   :  { %v1549_v16 = vpop.f32.mrb[0].mxu1 }
 0x1b6   :  { %216 = vst.msk [vmem:[%s2308_s12 + $0x8] sm:$0xff] %vm214_vm1, %v1549_v16  ;;  %v205_v17 = vpop.f32.mrb[1].mxu1  ;;  %v220_v19 = vsel %vm214_vm1, %v1549_v16, -inf }
 0x1b7   :  { %215 = vst.msk [vmem:[%s2308_s12] sm:$0xff] %vm214_vm1, %v205_v17  ;;  %v217_v18 = vsel %vm214_vm1, %v205_v17, -inf }
 0x1b8   :  { %218 = vmax.xlane.f32.xlu0 %v217_v18  ;;  %v591_v18 = vld [vmem:[%s2305_s9 + $0x50] sm:$0xff] }
 0x1bc   :  { %221 = vmax.xlane.f32.xlu0 %v220_v19 }
 0x245   :  { %v219_v21 = vpop.xlane.xlu0 %218 }
 0x246   :  { %v223_v22 = vsub.f32 %v205_v17, %v219_v21  ;;  %v583_v17 = vld [vmem:[%s2305_s9 + $0x10] sm:$0xff]  ;;  %v600_v21 = vld [vmem:[%s2305_s9 + $0x98] sm:$0xff] }
 0x248   :  { %v225_v23 = vmul.f32 1.442695, %v223_v22  ;;  %v608_v22 = vld [vmem:[%s2305_s9 + $0xd8] sm:$0xff] }
 0x249   :  { %v222_v24 = vpop.xlane.xlu0 %221 }
 0x24a   :  { %1694 = vpow2.f32 %v225_v23  ;;  %v224_v25 = vsub.f32 %v1549_v16, %v222_v24 }
 0x24c   :  { %v227_v26 = vmul.f32 1.442695, %v224_v25 }
 0x24e   :  { %1696 = vpow2.f32 %v227_v26  ;;  %v1604_v26 = vpack.c.bf16 %v591_v18, %v583_v17  ;;  %v1174_v17 = vld [vmem:[%s2306_s10 + $0x88] sm:$0xff]  ;;  %v1205_v18 = vld [vmem:[%s2306_s10 + $0x180] sm:$0xff] }
 0x254   :  { %v1695_v27 = vpop.eup %1694 }
 0x255   :  { %1552 = vmatprep.mubr.msk.f32.mxu0 %vm214_vm1, %v1695_v27 }
 0x258   :  { %v1697_v28 = vpop.eup %1696 }
 0x259   :  { %1553 = vmatmul.mubr.msk.f32.vlgmr.msra.gmra.mrb[2].mxu0 %vm214_vm1, %v1697_v28 }
 0x25a   :  { %1561 = vmatpush3.msra.mxu0 %v397_v30 }
 0x25b   :  { %1595 = vmatprep.subr.bf16.mxu0 %v1594_v33 }
 0x32c   :  { %v1554_v34 = vpop.f32.mrb[2].mxu0 }
 0x32d   :  { %1698 = vrcp.f32 %v1554_v34  ;;  %v302_v35 = vpop.f32.mrb[3].mxu0 }
 0x32e   :  { %1700 = vrcp.f32 %v302_v35 }
 0x337   :  { %v1699_v38 = vpop.eup %1698 }
 0x338   :  { %v1701_v41 = vpop.eup %1700  ;;  %v1908_v44 = vmul.f32 %v1699_v38, %v1697_v28  ;;  %v599_v28 = vld [vmem:[%s2305_s9 + $0x90] sm:$0xff] }
 0x339   :  { %v1906_v42 = vmul.f32 %v1701_v41, %v1695_v27  ;;  %v1606_v27 = vpack.c.bf16 %v608_v22, %v600_v21  ;;  %v1608_v36 = vpack.c.bf16 %v607_v29, %v599_v28  ;;  %v587_v38 = vld [vmem:[%s2305_s9 + $0x30] sm:$0xff]  ;;  %v604_v41 = vld [vmem:[%s2305_s9 + $0xb8] sm:$0xff]  ;;  %v1157_v22 = vld [vmem:[%s2306_s10] sm:$0xff] }
 0x33a   :  { %v1620_v48 = vpack.c.bf16 %v595_v39, %v587_v38  ;;  %v1176_v28 = vld [vmem:[%s2306_s10 + $0x98] sm:$0xff]  ;;  %v1207_v29 = vld [vmem:[%s2306_s10 + $0x190] sm:$0xff] }
 0x33b   :  { %1557 = vmatprep.mubr.msk.f32.mxu1 %vm214_vm1, %v1906_v42  ;;  %1562 = vmatprep.mubr.msk.f32.mxu0 %vm214_vm1, %v1906_v42  ;;  %v1191_v39 = vld [vmem:[%s2306_s10 + $0x110] sm:$0xff] }
 0x33c   :  { %1558 = vmatmul.mubr.msk.f32.vlgmr.msra.gmra.mrb[2].mxu1 %vm214_vm1, %v1908_v44  ;;  %1563 = vmatmul.mubr.msk.f32.vlgmr.msra.gmra.mrb[4].mxu0 %vm214_vm1, %v1908_v44 }
 0x33d   :  { %1597 = vmatpush1.bf16.msra.mxu0 %v1596_v43  ;;  %677 = vmatprep.mubr.f32.mxu0 %v1758_v51  ;;  %v612_v43 = vld [vmem:[%s2305_s9 + $0xf8] sm:$0xff] }
 0x33e   :  { %1599 = vmatprep.subr.bf16.mxu0 %v1598_v45  ;;  %1593 = vmatpush3.bf16.msra.mxu1 %v1590_v0  ;;  %v1622_v49 = vpack.c.bf16 %v612_v43, %v604_v41  ;;  %v1177_v41 = vld [vmem:[%s2306_s10 + $0xa0] sm:$0xff] }
 0x33f   :  { %1569 = vmatprep.subr.mxu1 %v494_v1  ;;  %v1209_v43 = vld [vmem:[%s2306_s10 + $0x1a0] sm:$0xff] }
 0x341   :  { %1601 = vmatpush1.bf16.msra.mxu0 %v1600_v50  ;;  %v603_v50 = vld [vmem:[%s2305_s9 + $0xb0] sm:$0xff] }
 0x342   :  { %1611 = vmatprep.subr.bf16.mxu0 %v1610_v52  ;;  %1570 = vmatpush3.msra.mxu1 %v494_v1  ;;  %v611_v52 = vld [vmem:[%s2305_s9 + $0xf0] sm:$0xff] }
 0x343   :  { %1603 = vmatprep.subr.bf16.mxu1 %v1602_v4  ;;  %v1624_v55 = vpack.c.bf16 %v611_v52, %v603_v50 }
 0x344   :  { %1406 = vmatmul.mubr.msk.f32.vlgmr.msra.gmra.mrb[6].mxu0 %vm47_vm0, %v1861_v15 }
 0x345   :  { %1613 = vmatpush1.bf16.msra.mxu0 %v1612_v57  ;;  %683 = vmatprep.mubr.f32.mxu0 %v1758_v51  ;;  %v924_v57 = vld [vmem:[%s2304_s8 + $0x18] sm:$0xff] }
 0x346   :  { %1615 = vmatprep.subr.bf16.mxu0 %v1614_v58 }
 0x348   :  { %1407 = vmatmul.mubr.msk.f32.gmra.mrb[8].mxu0 %vm47_vm0, %v1859_v14 }
 0x349   :  { %1617 = vmatpush1.bf16.msra.mxu0 %v1616_v61  ;;  %831 = vmatprep.mubr.f32.mxu0 %v1758_v51 }
 0x34a   :  { %931 = vmatprep.subr.mxu0 %v922_v5 }
 0x34c   :  { %1410 = vmatmul.mubr.msk.f32.vlgmr.msra.gmra.mrb[10].mxu0 %vm47_vm0, %v1861_v15 }
 0x34d   :  { %837 = vmatprep.mubr.f32.mxu0 %v1758_v51  ;;  %932 = vmatpush1.msra.mxu0 %v921_v6 }
 0x350   :  { %1411 = vmatmul.mubr.msk.f32.gmra.mrb[12].mxu0 %vm47_vm0, %v1859_v14 }
 0x351   :  { %995 = vmatprep.mubr.f32.mxu0 %v1758_v51 }
 0x40f   :  { %v1559_v7 = vpop.f32.mrb[2].mxu1  ;;  %v1564_v8 = vpop.f32.mrb[4].mxu0 }
 0x410   :  { %vm474_vm2 = vcmp.gt.f32.partialorder %v1559_v7, %v1564_v8  ;;  %vm478_vm3 = vcmp.eq.f32.partialorder %v1559_v7, %v1564_v8  ;;  %v388_v10 = vpop.f32.mrb[3].mxu1  ;;  %v464_v11 = vpop.f32.mrb[5].mxu0 }
 0x411   :  { %v480_v12 = vsel %vm478_vm3, 1.0, %v1758_v51  ;;  %vm473_vm4 = vcmp.gt.f32.partialorder %v388_v10, %v464_v11  ;;  %vm477_vm5 = vcmp.eq.f32.partialorder %v388_v10, %v464_v11  ;;  %v476_v19 = vsel %vm474_vm2, 1.0, %v1758_v51 }
 0x412   :  { %v489_v13 = vmul.f32 %v1403_v9, %v480_v12  ;;  %v479_v16 = vsel %vm477_vm5, 1.0, %v1758_v51  ;;  %v475_v24 = vsel %vm473_vm4, 1.0, %v1758_v51 }
 0x413   :  { %v488_v20 = vmul.f32 %v1403_v9, %v479_v16 }
 0x414   :  { %v491_v23 = vadd.f32 %v489_v13, %v476_v19 }
 0x415   :  { %v490_v25 = vadd.f32 %v488_v20, %v475_v24  ;;  %v1206_v20 = vld [vmem:[%s2306_s10 + $0x188] sm:$0xff]  ;;  %v1189_v24 = vld [vmem:[%s2306_s10 + $0x100] sm:$0xff] }
 0x416   :  { %v1658_v21 = vpack.c.bf16 %v1206_v20, %v1205_v18  ;;  %v1165_v20 = vld [vmem:[%s2306_s10 + $0x40] sm:$0xff] }
 0x417   :  { %v2007_v30 = vpop.f32.mrb[6].mxu0  ;;  %1571 = vmatprep.mubr.msk.f32.mxu1 %vm495_vm6, %v490_v25  ;;  %v1190_v25 = vld [vmem:[%s2306_s10 + $0x108] sm:$0xff] }
 0x418   :  { %v1418_v33 = vmul.f32 -1.442695, %v2007_v30  ;;  %v681_v34 = vpop.f32.mrb[7].mxu0  ;;  %1572 = vmatmul.mubr.msk.f32.vlgmr.msra.gmra.mrb[4].mxu1 %vm495_vm6, %v491_v23  ;;  %v1158_v23 = vld [vmem:[%s2306_s10 + $0x8] sm:$0xff] }
 0x419   :  { %v1419_v35 = vmul.f32 -1.442695, %v681_v34  ;;  %1605 = vmatpush1.bf16.msra.mxu1 %v1604_v26  ;;  %754 = vmatprep.mubr.f32.mxu1 %v1758_v51  ;;  %v1175_v26 = vld [vmem:[%s2306_s10 + $0x90] sm:$0xff]  ;;  %v1628_v32 = vpack.c.bf16 %v1158_v23, %v1157_v22 }
 0x41a   :  { %1702 = vpow2.f32 %v1418_v33  ;;  %1607 = vmatprep.subr.bf16.mxu1 %v1606_v27  ;;  %v1660_v33 = vpack.c.bf16 %v1190_v25, %v1189_v24  ;;  %v1197_v24 = vld [vmem:[%s2306_s10 + $0x140] sm:$0xff]  ;;  %v1198_v25 = vld [vmem:[%s2306_s10 + $0x148] sm:$0xff] }
 0x41b   :  { %1704 = vpow2.f32 %v1419_v35  ;;  %v685_v40 = vpop.f32.mrb[8].mxu0  ;;  %v1160_v35 = vld [vmem:[%s2306_s10 + $0x18] sm:$0xff] }
 0x41c   :  { %v1422_v45 = vmul.f32 -1.442695, %v685_v40  ;;  %v687_v46 = vpop.f32.mrb[9].mxu0 }
 0x41d   :  { %v1423_v47 = vmul.f32 -1.442695, %v687_v46  ;;  %1609 = vmatpush1.bf16.msra.mxu1 %v1608_v36 }
 0x41e   :  { %1706 = vpow2.f32 %v1422_v45  ;;  %1619 = vmatprep.subr.bf16.mxu1 %v1618_v37  ;;  %v1630_v37 = vpack.c.bf16 %v1176_v28, %v1175_v26  ;;  %v1210_v45 = vld [vmem:[%s2306_s10 + $0x1a8] sm:$0xff]  ;;  %v1183_v26 = vld [vmem:[%s2306_s10 + $0xd0] sm:$0xff]  ;;  %v1184_v28 = vld [vmem:[%s2306_s10 + $0xd8] sm:$0xff] }
 0x41f   :  { %1708 = vpow2.f32 %v1423_v47  ;;  %v833_v53 = vpop.f32.mrb[10].mxu0 }
 0x420   :  { %1408 = vmatmul.mubr.msk.f32.vlgmr.msra.gmra.mrb[6].mxu1 %vm47_vm0, %v1861_v15  ;;  %v835_v54 = vpop.f32.mrb[11].mxu0 }
 0x421   :  { %1621 = vmatpush1.bf16.msra.mxu1 %v1620_v48  ;;  %760 = vmatprep.mubr.f32.mxu1 %v1758_v51  ;;  %v1161_v48 = vld [vmem:[%s2306_s10 + $0x20] sm:$0xff] }
 0x422   :  { %1623 = vmatprep.subr.bf16.mxu1 %v1622_v49  ;;  %v1162_v49 = vld [vmem:[%s2306_s10 + $0x28] sm:$0xff] }
 0x423   :  { %v839_v56 = vpop.f32.mrb[12].mxu0 }
 0x424   :  { %v1703_v58 = vpop.eup %1702  ;;  %1409 = vmatmul.mubr.msk.f32.gmra.mrb[8].mxu1 %vm47_vm0, %v1859_v14  ;;  %v841_v59 = vpop.f32.mrb[13].mxu0 }
 0x425   :  { %v1705_v60 = vpop.eup %1704  ;;  %v1109_v61 = vadd.f32 1.0, %v1703_v58  ;;  %1625 = vmatpush1.bf16.msra.mxu1 %v1624_v55  ;;  %908 = vmatprep.mubr.f32.mxu1 %v1758_v51  ;;  %v1179_v55 = vld [vmem:[%s2306_s10 + $0xb0] sm:$0xff]  ;;  %v1212_v58 = vld [vmem:[%s2306_s10 + $0x1b8] sm:$0xff] }
 0x426   :  { %v1110_v62 = vadd.f32 1.0, %v1705_v60  ;;  %1008 = vmatprep.subr.mxu1 %v924_v57  ;;  %v1211_v57 = vld [vmem:[%s2306_s10 + $0x1b0] sm:$0xff] }
 0x427   :  { %1710 = vrcp.f32 %v1109_v61 }
 0x428   :  { %v1707_v0 = vpop.eup %1706  ;;  %1712 = vrcp.f32 %v1110_v62  ;;  %1412 = vmatmul.mubr.msk.f32.vlgmr.msra.gmra.mrb[10].mxu1 %vm47_vm0, %v1861_v15  ;;  %v1636_v62 = vpack.c.bf16 %v1162_v49, %v1161_v48 }
 0x429   :  { %v1709_v1 = vpop.eup %1708  ;;  %v1113_v2 = vadd.f32 1.0, %v1707_v0  ;;  %914 = vmatprep.mubr.f32.mxu1 %v1758_v51  ;;  %1009 = vmatpush1.msra.mxu1 %v923_v63  ;;  %v1163_v0 = vld [vmem:[%s2306_s10 + $0x30] sm:$0xff] }
 0x42a   :  { %v1114_v3 = vadd.f32 1.0, %v1709_v1  ;;  %1659 = vmatprep.subr.bf16.mxu1 %v1658_v21  ;;  %v1164_v1 = vld [vmem:[%s2306_s10 + $0x38] sm:$0xff]  ;;  %v1166_v21 = vld [vmem:[%s2306_s10 + $0x48] sm:$0xff] }
 0x42b   :  { %1714 = vrcp.f32 %v1113_v2  ;;  %v1640_v18 = vpack.c.bf16 %v1164_v1, %v1163_v0 }
 0x42c   :  { %1716 = vrcp.f32 %v1114_v3  ;;  %1413 = vmatmul.mubr.msk.f32.gmra.mrb[12].mxu1 %vm47_vm0, %v1859_v14  ;;  %v1173_v14 = vld [vmem:[%s2306_s10 + $0x80] sm:$0xff]  ;;  %v1670_v3 = vpack.c.bf16 %v1212_v58, %v1211_v57  ;;  %v1202_v58 = vld [vmem:[%s2306_s10 + $0x168] sm:$0xff] }
 0x42d   :  { %1072 = vmatprep.mubr.f32.mxu1 %v1758_v51  ;;  %v1626_v19 = vpack.c.bf16 %v1174_v17, %v1173_v14  ;;  %v1201_v57 = vld [vmem:[%s2306_s10 + $0x160] sm:$0xff] }
 0x42e   :  { %v1684_v0 = vpack.c.bf16 %v1202_v58, %v1201_v57 }
 0x42f   :  { %1627 = vmatprep.subr.bf16.mxu0 %v1626_v19 }
 0x431   :  { %v1711_v4 = vpop.eup %1710 }
 0x432   :  { %v1713_v5 = vpop.eup %1712  ;;  %v1133_v6 = vmul.f32 %v1711_v4, %v2007_v30  ;;  %v1208_v30 = vld [vmem:[%s2306_s10 + $0x198] sm:$0xff]  ;;  %v1195_v4 = vld [vmem:[%s2306_s10 + $0x130] sm:$0xff] }
 0x433   :  { %v1134_v7 = vmul.f32 %v1713_v5, %v681_v34  ;;  %v1159_v34 = vld [vmem:[%s2306_s10 + $0x10] sm:$0xff]  ;;  %v1662_v38 = vpack.c.bf16 %v1208_v30, %v1207_v29  ;;  %v1196_v5 = vld [vmem:[%s2306_s10 + $0x138] sm:$0xff] }
 0x434   :  { %v2054_v8 = vmul.f32 %v1133_v6, %v833_v53  ;;  %v1666_v53 = vpack.c.bf16 %v1210_v45, %v1209_v43  ;;  %v1181_v6 = vld [vmem:[%s2306_s10 + $0xc0] sm:$0xff]  ;;  %v1672_v19 = vpack.c.bf16 %v1196_v5, %v1195_v4  ;;  %v1215_v29 = vld [vmem:[%s2306_s10 + $0x1d0] sm:$0xff]  ;;  %v1216_v30 = vld [vmem:[%s2306_s10 + $0x1d8] sm:$0xff] }
 0x435   :  { %v1715_v15 = vpop.eup %1714  ;;  %v2056_v9 = vmul.f32 %v1134_v7, %v835_v54  ;;  %v1194_v54 = vld [vmem:[%s2306_s10 + $0x128] sm:$0xff]  ;;  %v1217_v43 = vld [vmem:[%s2306_s10 + $0x1e0] sm:$0xff] }
 0x436   :  { %v1717_v10 = vpop.eup %1716  ;;  %v1137_v11 = vmul.f32 %v1715_v15, %v685_v40  ;;  %v1192_v40 = vld [vmem:[%s2306_s10 + $0x118] sm:$0xff]  ;;  %v1182_v15 = vld [vmem:[%s2306_s10 + $0xc8] sm:$0xff] }
 0x437   :  { %v1138_v12 = vmul.f32 %v1717_v10, %v687_v46  ;;  %v1632_v46 = vpack.c.bf16 %v1160_v35, %v1159_v34  ;;  %v1664_v47 = vpack.c.bf16 %v1192_v40, %v1191_v39  ;;  %v1213_v10 = vld [vmem:[%s2306_s10 + $0x1c0] sm:$0xff]  ;;  %v1642_v22 = vpack.c.bf16 %v1182_v15, %v1181_v6  ;;  %v1167_v34 = vld [vmem:[%s2306_s10 + $0x50] sm:$0xff]  ;;  %v1168_v35 = vld [vmem:[%s2306_s10 + $0x58] sm:$0xff] }
 0x438   :  { %v2058_v13 = vmul.f32 %v1137_v11, %v839_v56  ;;  %v1214_v11 = vld [vmem:[%s2306_s10 + $0x1c8] sm:$0xff]  ;;  %v1200_v39 = vld [vmem:[%s2306_s10 + $0x158] sm:$0xff]  ;;  %v1185_v40 = vld [vmem:[%s2306_s10 + $0xe0] sm:$0xff] }
 0x439   :  { %v2060_v16 = vmul.f32 %v1138_v12, %v841_v59  ;;  %v1674_v23 = vpack.c.bf16 %v1214_v11, %v1213_v10  ;;  %v1218_v45 = vld [vmem:[%s2306_s10 + $0x1e8] sm:$0xff] }
 0x4eb   :  { %v1573_v27 = vpop.f32.mrb[4].mxu1 }
 0x4ec   :  { %v568_v31 = vpop.f32.mrb[5].mxu1  ;;  %vm578_vm8 = vcmp.lt.f32.partialorder %v1573_v27, 2.0 }
 0x4ed   :  { %vm577_vm7 = vcmp.lt.f32.partialorder %v568_v31, 2.0  ;;  %v580_v50 = vsel %vm578_vm8, %v1908_v44, 0.0  ;;  %v1180_v44 = vld [vmem:[%s2306_s10 + $0xb8] sm:$0xff] }
 0x4ee   :  { %v579_v36 = vsel %vm577_vm7, %v1906_v42, 0.0  ;;  %v1178_v42 = vld [vmem:[%s2306_s10 + $0xa8] sm:$0xff]  ;;  %v1638_v2 = vpack.c.bf16 %v1180_v44, %v1179_v55  ;;  %v1682_v55 = vpack.c.bf16 %v1218_v45, %v1217_v43 }
 0x4ef   :  { %1414 = vmatmul.mubr.msk.f32.vlgmr.msra.gmra.mrb[14].mxu0 %vm214_vm1, %v579_v36  ;;  %1416 = vmatmul.mubr.msk.f32.vlgmr.msra.gmra.mrb[14].mxu1 %vm214_vm1, %v579_v36  ;;  %v1634_v52 = vpack.c.bf16 %v1178_v42, %v1177_v41  ;;  %v1646_v36 = vpack.c.bf16 %v1184_v28, %v1183_v26  ;;  %v1186_v42 = vld [vmem:[%s2306_s10 + $0xe8] sm:$0xff]  ;;  %v1204_v26 = vld [vmem:[%s2306_s10 + $0x178] sm:$0xff] }
 0x4f0   :  { %1001 = vmatprep.mubr.f32.mxu0 %v1758_v51  ;;  %1078 = vmatprep.mubr.f32.mxu1 %v1758_v51  ;;  %v1193_v51 = vld [vmem:[%s2306_s10 + $0x120] sm:$0xff]  ;;  %v1170_v44 = vld [vmem:[%s2306_s10 + $0x68] sm:$0xff] }
 0x4f1   :  { %1629 = vmatpush3.bf16.msra.mxu0 %v1628_v32  ;;  %1661 = vmatpush3.bf16.msra.mxu1 %v1660_v33  ;;  %v1668_v63 = vpack.c.bf16 %v1194_v54, %v1193_v51  ;;  %v1644_v32 = vpack.c.bf16 %v1166_v21, %v1165_v20  ;;  %v1676_v33 = vpack.c.bf16 %v1198_v25, %v1197_v24  ;;  %v1187_v20 = vld [vmem:[%s2306_s10 + $0xf0] sm:$0xff] }
 0x4f2   :  { %1631 = vmatprep.subr.bf16.mxu0 %v1630_v37  ;;  %1663 = vmatprep.subr.bf16.mxu1 %v1662_v38  ;;  %v1678_v37 = vpack.c.bf16 %v1216_v30, %v1215_v29  ;;  %v1199_v38 = vld [vmem:[%s2306_s10 + $0x150] sm:$0xff]  ;;  %v1650_v54 = vpack.c.bf16 %v1186_v42, %v1185_v40 }
 0x4f3   :  { %v2143_v56 = vpop.f32.mrb[6].mxu1  ;;  %1415 = vmatmul.mubr.msk.f32.gmra.mrb[16].mxu0 %vm214_vm1, %v580_v50  ;;  %1417 = vmatmul.mubr.msk.f32.gmra.mrb[16].mxu1 %vm214_vm1, %v580_v50  ;;  %v1648_v50 = vpack.c.bf16 %v1168_v35, %v1167_v34  ;;  %v1203_v25 = vld [vmem:[%s2306_s10 + $0x170] sm:$0xff] }
 0x4f4   :  { %v1420_v59 = vmul.f32 -1.442695, %v2143_v56  ;;  %v2157_v60 = vpop.f32.mrb[7].mxu1 }
 0x4f5   :  { %v1421_v61 = vmul.f32 -1.442695, %v2157_v60  ;;  %1633 = vmatpush3.bf16.msra.mxu0 %v1632_v46  ;;  %1665 = vmatpush3.bf16.msra.mxu1 %v1664_v47 }
 0x4f6   :  { %1718 = vpow2.f32 %v1420_v59  ;;  %1635 = vmatprep.subr.bf16.mxu0 %v1634_v52  ;;  %1667 = vmatprep.subr.bf16.mxu1 %v1666_v53  ;;  %v1680_v52 = vpack.c.bf16 %v1200_v39, %v1199_v38  ;;  %v1169_v53 = vld [vmem:[%s2306_s10 + $0x60] sm:$0xff] }
 0x4f7   :  { %1720 = vpow2.f32 %v1421_v61  ;;  %v2175_v7 = vpop.f32.mrb[8].mxu1 }
 0x4f8   :  { %v1424_v12 = vmul.f32 -1.442695, %v2175_v7  ;;  %v2187_v14 = vpop.f32.mrb[9].mxu1 }
 0x4f9   :  { %v1425_v17 = vmul.f32 -1.442695, %v2187_v14  ;;  %1637 = vmatpush3.bf16.msra.mxu0 %v1636_v62  ;;  %1669 = vmatpush3.bf16.msra.mxu1 %v1668_v63  ;;  %v1652_v63 = vpack.c.bf16 %v1170_v44, %v1169_v53 }
 0x4fa   :  { %1722 = vpow2.f32 %v1424_v12  ;;  %1639 = vmatprep.subr.bf16.mxu0 %v1638_v2  ;;  %1671 = vmatprep.subr.bf16.mxu1 %v1670_v3 }
 0x4fb   :  { %1724 = vpow2.f32 %v1425_v17  ;;  %v910_v27 = vpop.f32.mrb[10].mxu1 }
 0x4fc   :  { %v912_v31 = vpop.f32.mrb[11].mxu1 }
 0x4fd   :  { %1641 = vmatpush3.bf16.msra.mxu0 %v1640_v18  ;;  %1673 = vmatpush3.bf16.msra.mxu1 %v1672_v19 }
 0x4fe   :  { %1643 = vmatprep.subr.bf16.mxu0 %v1642_v22  ;;  %1675 = vmatprep.subr.bf16.mxu1 %v1674_v23  ;;  %v1172_v22 = vld [vmem:[%s2306_s10 + $0x78] sm:$0xff] }
 0x4ff   :  { %v916_v41 = vpop.f32.mrb[12].mxu1 }
 0x500   :  { %v1719_v46 = vpop.eup %1718  ;;  %v918_v47 = vpop.f32.mrb[13].mxu1 }
 0x501   :  { %v1721_v48 = vpop.eup %1720  ;;  %v1111_v49 = vadd.f32 1.0, %v1719_v46  ;;  %1645 = vmatpush3.bf16.msra.mxu0 %v1644_v32  ;;  %1677 = vmatpush3.bf16.msra.mxu1 %v1676_v33 }
 0x502   :  { %v1112_v51 = vadd.f32 1.0, %v1721_v48  ;;  %1647 = vmatprep.subr.bf16.mxu0 %v1646_v36  ;;  %1679 = vmatprep.subr.bf16.mxu1 %v1678_v37 }
 0x503   :  { %1726 = vrcp.f32 %v1111_v49 }
 0x504   :  { %v1723_v59 = vpop.eup %1722  ;;  %1728 = vrcp.f32 %v1112_v51 }
 0x505   :  { %v1725_v61 = vpop.eup %1724  ;;  %v1115_v62 = vadd.f32 1.0, %v1723_v59  ;;  %1649 = vmatpush3.bf16.msra.mxu0 %v1648_v50  ;;  %1681 = vmatpush3.bf16.msra.mxu1 %v1680_v52 }
 0x506   :  { %v1116_v1 = vadd.f32 1.0, %v1725_v61  ;;  %1651 = vmatprep.subr.bf16.mxu0 %v1650_v54  ;;  %1683 = vmatprep.subr.bf16.mxu1 %v1682_v55 }
 0x507   :  { %1730 = vrcp.f32 %v1115_v62 }
 0x508   :  { %1732 = vrcp.f32 %v1116_v1 }
 0x509   :  { %1653 = vmatpush3.bf16.msra.mxu0 %v1652_v63  ;;  %1685 = vmatpush3.bf16.msra.mxu1 %v1684_v0 }
 0x50d   :  { %v1727_v2 = vpop.eup %1726 }
 0x50e   :  { %v1729_v3 = vpop.eup %1728  ;;  %v1135_v4 = vmul.f32 %v1727_v2, %v2143_v56  ;;  %v1188_v56 = vld [vmem:[%s2306_s10 + $0xf8] sm:$0xff] }
 0x50f   :  { %v1136_v5 = vmul.f32 %v1729_v3, %v2157_v60  ;;  %v1219_v60 = vld [vmem:[%s2306_s10 + $0x1f0] sm:$0xff]  ;;  %v1654_v21 = vpack.c.bf16 %v1188_v56, %v1187_v20 }
 0x510   :  { %v1143_v6 = vmul.f32 %v1135_v4, %v910_v27  ;;  %v1688_v27 = vpack.c.bf16 %v1204_v26, %v1203_v25 }
 0x511   :  { %v1731_v15 = vpop.eup %1730  ;;  %v1144_v10 = vmul.f32 %v1136_v5, %v912_v31  ;;  %1655 = vmatprep.subr.bf16.mxu0 %v1654_v21 }
 0x512   :  { %v1733_v11 = vpop.eup %1732  ;;  %v1139_v12 = vmul.f32 %v1731_v15, %v2175_v7  ;;  %v1220_v7 = vld [vmem:[%s2306_s10 + $0x1f8] sm:$0xff] }
 0x513   :  { %v1140_v17 = vmul.f32 %v1733_v11, %v2187_v14  ;;  %v1171_v14 = vld [vmem:[%s2306_s10 + $0x70] sm:$0xff]  ;;  %v1686_v23 = vpack.c.bf16 %v1220_v7, %v1219_v60  ;;  %s1759_s10 = smov [#allocation2]  }
 0x514   :  { %v1147_v18 = vmul.f32 %v1139_v12, %v916_v41  ;;  %v1656_v24 = vpack.c.bf16 %v1172_v22, %v1171_v14  ;;  %s1378_s1 = sshll.u32 %s1759_s10, 4  ;;  %s1379_s1 = int_to_ptr.vmem [resolvable:$true] %s1378_s1 }
 0x515   :  { %v1148_v19 = vmul.f32 %v1140_v17, %v918_v47  ;;  %1687 = vmatprep.subr.bf16.mxu1 %v1686_v23  ;;  %s1734_s19 = scalar_lea.vmem %s1379_s1, 256  ;;  %p1739_p1 = scmp.lt.s32.totalorder %s1379_s1, %s1379_s1 }
 0x516   :  { %1657 = vmatpush3.bf16.msra.mxu0 %v1656_v24  ;;  %1689 = vmatpush3.bf16.msra.mxu1 %v1688_v27  ;;  %p1735_p0 = scmp.ne.s32.totalorder %s1379_s1, %s1734_s19  ;;  %p1740_p2 = scmp.lt.s32.totalorder %s1734_s19, %s1734_s19 }
 0x518   :  { %p1741_p3 = por %p1740_p2, %p1739_p1 }
 0x51a   :  { %p1742_p4 = pnand %p1741_p3, %p1735_p0 }
 0x5c2   :  { %v997_v28 = vpop.f32.mrb[14].mxu0  ;;  %v1074_v29 = vpop.f32.mrb[14].mxu1 }
 0x5c3   :  { %v1149_v30 = vmul.f32 %v2054_v8, %v997_v28  ;;  %v1151_v31 = vmul.f32 %v1143_v6, %v1074_v29  ;;  %v999_v32 = vpop.f32.mrb[15].mxu0  ;;  %v1076_v33 = vpop.f32.mrb[15].mxu1 }
 0x5c4   :  { %v1150_v34 = vmul.f32 %v2056_v9, %v999_v32  ;;  %v1152_v35 = vmul.f32 %v1144_v10, %v1076_v33 }
 0x5c6   :  { %v1003_v36 = vpop.f32.mrb[16].mxu0  ;;  %v1080_v37 = vpop.f32.mrb[16].mxu1  ;;  %1285 = vmatprep.mubr.f32.mxu0 %v1150_v34  ;;  %1360 = vmatprep.mubr.f32.mxu1 %v1152_v35 }
 0x5c7   :  { %v1153_v38 = vmul.f32 %v2058_v13, %v1003_v36  ;;  %v1155_v39 = vmul.f32 %v1147_v18, %v1080_v37  ;;  %v1005_v40 = vpop.f32.mrb[17].mxu0  ;;  %v1082_v41 = vpop.f32.mrb[17].mxu1  ;;  %1286 = vmatmul.mubr.f32.vlgmr.msra.gmra.mrb[18].mxu0 %v1149_v30  ;;  %1361 = vmatmul.mubr.f32.vlgmr.msra.gmra.mrb[18].mxu1 %v1151_v31 }
 0x5c8   :  { %v1154_v42 = vmul.f32 %v2060_v16, %v1005_v40  ;;  %v1156_v8 = vmul.f32 %v1148_v19, %v1082_v41 }
 0x5ca   :  { %1290 = vmatprep.mubr.f32.mxu0 %v1154_v42  ;;  %1365 = vmatprep.mubr.f32.mxu1 %v1156_v8 }
 0x5cb   :  { %1291 = vmatmul.mubr.f32.gmra.mrb[20].mxu0 %v1153_v38  ;;  %1366 = vmatmul.mubr.f32.gmra.mrb[20].mxu1 %v1155_v39 }
 0x69a   :  { %v1484_v9 = vpop.f32.mrb[18].mxu0  ;;  %v1522_v43 = vpop.f32.mrb[18].mxu1 }
 0x69b   :  { %v1485_v45 = vpop.f32.mrb[19].mxu0  ;;  %v1523_v46 = vpop.f32.mrb[19].mxu1 }
 0x69c   :  { %v1486_v47 = vadd.f32 %v1485_v45, %v1484_v9  ;;  %v1524_v48 = vadd.f32 %v1523_v46, %v1522_v43 }
 0x69e   :  { %v1363_v49 = vadd.f32 %v1524_v48, %v1486_v47  ;;  %v1487_v13 = vpop.f32.mrb[20].mxu0  ;;  %v1525_v50 = vpop.f32.mrb[20].mxu1 }
 0x69f   :  { %v1488_v52 = vpop.f32.mrb[21].mxu0  ;;  %v1526_v53 = vpop.f32.mrb[21].mxu1 }
 0x6a0   :  { %1371 = vst.msk [vmem:[#allocation2] sm:$0xff] %vm47_vm0, %v1363_v49  ;;  %v1489_v16 = vadd.f32 %v1488_v52, %v1487_v13  ;;  %v1527_v51 = vadd.f32 %v1526_v53, %v1525_v50 }
 0x6a2   :  { %v1368_v54 = vadd.f32 %v1527_v51, %v1489_v16 }
 0x6a4   :  { %1372 = vst.msk [vmem:[#allocation2 + $0x8] sm:$0xff] %vm47_vm0, %v1368_v54 }
 0x6a5   :  { %1745 = shalt.err (!%p1742_p4)
}
 0x6a6   :  { %s1746_s2 = scalar_lea.hbm %s2307_s11, 256 }
 0x6a7   :  { %p1747_p5 = scmp.ne.s32.totalorder %s2307_s11, %s1746_s2  ;;  %p1750_p6 = scmp.lt.u32.totalorder %s1746_s2, %s2307_s11 }
 0x6a9   :  { %p1752_p7 = pnand %p1750_p6, %p1747_p5 }
 0x6ab   :  { %1755 = shalt.err (!%p1752_p7)
}
 0x6ac   :  { %s1760_s25 = smov 128   ;;  %s1761_s7 = smov 8  }
 0x6ad   :  { %1384 = dma.vmem_to_hbm [thread:$0]  %s1379_s1, 256, %s2307_s11, [#allocation3], %s1760_s25, %s1760_s25, %s1761_s7  }
 0x6ae   :  { %1756 = dma.done.wait [#allocation3], 256  }
 0x6af   :  { %1757 = vsyncadd [#allocation3], 4294967040 }
 0x6b0   :  { %1392 = vsyncpa [#allocation3], 1 }

</bundles_post_ra>
